<compile_context>
chip_gen: v7x
topology: tpu7x:2x2x1
jax: 0.10.0
libtpu: 0.0.40
codegen_flags: <defaults>
</compile_context>

<pallas_src>
import functools
import math

import jax
import jax.numpy as jnp
from jax.experimental import pallas as pl
from jax.experimental.pallas import tpu as pltpu


def _pick_tile(n):
    # 256-aligned tiles fill the v6e/v7x MXU; 128 is optimal on v5e and legal
    # everywhere.  Fall back to the full extent (block == full dim is allowed).
    for t in (256, 128):
        if n % t == 0:
            return t
    return n


def _vmem_limit(est_bytes):
    # Generous headroom for in-kernel temporaries; a 32 MiB floor matches the
    # scoped default on v6e/v7x and is well under v5e's physical VMEM, and the
    # 64 MiB cap stays within v7x physical VMEM.
    return int(min(64 * 1024 * 1024, max(32 * 1024 * 1024, 4 * int(est_bytes))))


def _wh_kernel(h_ref, w_ref, a_ref, wh_ref, wh12_ref):
    """Wh = h @ W (bf16 operands, f32 accumulation); [Wh1|Wh2] = Wh @ a_packed."""
    wh = jnp.dot(h_ref[...], w_ref[...], preferred_element_type=jnp.float32)
    wh12_ref[...] = jnp.dot(wh, a_ref[...], preferred_element_type=jnp.float32)
    wh_ref[...] = wh.astype(wh_ref.dtype)


def _attn_kernel(adj_ref, wh12_k_ref, wh12_q_ref, wh12_full_ref, wh_ref,
                 o_ref, temp_acc, *, alpha, concat):
    """One (q-tile, k-tile) step of the masked attention + aggregation.

    adj_ref      : (tq, tk)   bf16  adjacency slab (streamed)
    wh12_k_ref   : (tk, 2)    f32   [Wh1|Wh2] rows of the k slab
    wh12_q_ref   : (tq, 2)    f32   [Wh1|Wh2] rows of the q slab
    wh12_full_ref: (N, 2)     f32   [Wh1|Wh2] for all nodes (gives Wh2 columns)
    wh_ref       : (N, Fout)  bf16  Wh, resident across the whole grid
    o_ref        : (tq, Fout) f32   output rows for the q slab
    temp_acc     : (tq, N)    f32   scratch accumulator for temp = adj @ e
    """
    k = pl.program_id(1)

    @pl.when(k == 0)
    def _():
        temp_acc[...] = jnp.zeros_like(temp_acc)

    wh2_row = wh12_full_ref[...][:, 1:2].T                 # (1, N)

    # e slab over the k rows: LeakyReLU(Wh1[k rows] + Wh2[all].T)
    pre_k = wh12_k_ref[...][:, 0:1] + wh2_row              # (tk, N)
    e_k = jnp.maximum(pre_k, alpha * pre_k)

    # temp[q rows, :] += adj[q rows, k rows] @ e[k rows, :].  Kept in f32
    # because only the sign of temp is used for the attention mask.
    temp_acc[...] += jnp.dot(adj_ref[...].astype(jnp.float32), e_k,
                             preferred_element_type=jnp.float32)

    @pl.when(k == pl.num_programs(1) - 1)
    def _():
        # e rows for the q slab, recomputed from the rank-1 broadcast (a full
        # (N,N) e is never resident).
        pre_q = wh12_q_ref[...][:, 0:1] + wh2_row           # (tq, N)
        e_q = jnp.maximum(pre_q, alpha * pre_q)

        att = jnp.where(temp_acc[...] > 0, e_q, -9.0e15)

        # Row softmax, left unnormalized: scale h_prime afterwards instead of
        # multiplying the full (tq, N) tile.
        att = att - jnp.max(att, axis=1, keepdims=True)
        p = jnp.exp(att)
        denom = jnp.sum(p, axis=1, keepdims=True)

        h_prime = jnp.dot(p.astype(jnp.bfloat16), wh_ref[...],
                          preferred_element_type=jnp.float32)
        h_prime = h_prime * pl.reciprocal(denom, approx=True)
        # TODO(synk): attention dropout (p=0.1) omitted -- eval-mode semantics.

        if concat:  # F.elu computed without generating inf on the positive side
            h_prime = jnp.where(
                h_prime > 0, h_prime, jnp.exp(jnp.minimum(h_prime, 0.0)) - 1.0)

        o_ref[...] = h_prime.astype(o_ref.dtype)


def graph_attention_layer(h, adj, W, a, *, alpha=0.2, concat=True):
    """Pallas forward matching GraphAttentionLayer.forward.

    h:   (1, N, Fin) or (N, Fin)
    adj: (1, N, N)   or (N, N)
    W:   (Fin, Fout)
    a:   (2*Fout, 1)
    Returns (N, Fout) (the torch module squeezes the leading batch dim).
    """
    if h.ndim == 3:
        h = jnp.squeeze(h, 0)
    if adj.ndim == 3:
        adj = jnp.squeeze(adj, 0)
    N, Fin = h.shape
    Fin_w, Fout = W.shape
    assert Fin == Fin_w and a.shape == (2 * Fout, 1)

    # Repack a: (2*Fout, 1) -> (Fout, 2); col 0 = a[:Fout], col 1 = a[Fout:].
    a_packed = jnp.transpose(a.reshape(2, Fout), (1, 0)).astype(jnp.float32)

    # bf16 MXU operands (f32 accumulation in-kernel); adj is 0/1, exact in bf16.
    h_bf = h.astype(jnp.bfloat16)
    w_bf = W.astype(jnp.bfloat16)
    adj_bf = adj.astype(jnp.bfloat16)

    # ---- stage 1: Wh = h @ W and [Wh1|Wh2] = Wh @ a_packed ------------------
    tm = _pick_tile(N)
    est1 = (2 * tm * Fin * 2 + Fin * Fout * 2 + Fout * 2 * 4
            + 2 * tm * Fout * 2 + 2 * tm * 2 * 4 + tm * Fout * 4)
    wh_bf, wh12 = pl.pallas_call(
        _wh_kernel,
        out_shape=(jax.ShapeDtypeStruct((N, Fout), jnp.bfloat16),
                   jax.ShapeDtypeStruct((N, 2), jnp.float32)),
        grid=(N // tm,),
        in_specs=[
            pl.BlockSpec((tm, Fin), lambda i: (i, 0)),
            pl.BlockSpec((Fin, Fout), lambda i: (0, 0)),
            pl.BlockSpec((Fout, 2), lambda i: (0, 0)),
        ],
        out_specs=(
            pl.BlockSpec((tm, Fout), lambda i: (i, 0)),
            pl.BlockSpec((tm, 2), lambda i: (i, 0)),
        ),
        compiler_params=pltpu.CompilerParams(
            dimension_semantics=("parallel",),
            vmem_limit_bytes=_vmem_limit(est1)),
    )(h_bf, w_bf, a_packed)

    # ---- stage 2: masked attention + aggregation on a (q, k) tile grid ------
    tq = tk = _pick_tile(N)
    est2 = (2 * tq * tk * 2            # adj slab (bf16, double-buffered)
            + 2 * (tq + tk) * 2 * 4    # Wh12 row slabs
            + N * 2 * 4                # Wh12 full (resident)
            + N * Fout * 2             # Wh full (bf16, resident)
            + 2 * tq * Fout * 4        # output (double-buffered)
            + tq * N * 4               # temp accumulator scratch
            + (tq + tk) * N * 4)       # e / attention temporaries
    kernel = functools.partial(_attn_kernel, alpha=float(alpha),
                               concat=bool(concat))
    out = pl.pallas_call(
        kernel,
        out_shape=jax.ShapeDtypeStruct((N, Fout), jnp.float32),
        grid=(N // tq, N // tk),
        in_specs=[
            # Streamed adjacency slab: default double-buffering overlaps its
            # DMA with the adj@e / att@Wh MXU work of the previous tile.
            pl.BlockSpec((tq, tk), lambda i, k: (i, k)),
            pl.BlockSpec((tk, 2), lambda i, k: (k, 0)),     # Wh12[k slab]
            pl.BlockSpec((tq, 2), lambda i, k: (i, 0)),     # Wh12[q slab]
            pl.BlockSpec((N, 2), lambda i, k: (0, 0)),      # Wh12 (all nodes)
            pl.BlockSpec((N, Fout), lambda i, k: (0, 0)),   # Wh (resident)
        ],
        out_specs=pl.BlockSpec((tq, Fout), lambda i, k: (i, 0)),
        scratch_shapes=[pltpu.VMEM((tq, N), jnp.float32)],
        compiler_params=pltpu.CompilerParams(
            dimension_semantics=("parallel", "arbitrary"),
            vmem_limit_bytes=_vmem_limit(est2)),
    )(adj_bf, wh12, wh12, wh12, wh_bf)
    return out


def _gat_reference(h, adj, W, a, *, alpha=0.2, concat=True):
    """Pure-JAX reference (mirrors the PyTorch module, f32 HIGHEST precision)."""
    hi = jnp.squeeze(h, 0) if h.ndim == 3 else h
    A = jnp.squeeze(adj, 0) if adj.ndim == 3 else adj
    Fout = W.shape[1]
    hp = jax.lax.Precision.HIGHEST
    Wh = jnp.dot(hi, W, precision=hp)
    Wh1 = jnp.dot(Wh, a[:Fout, :], precision=hp)
    Wh2 = jnp.dot(Wh, a[Fout:, :], precision=hp)
    pre = Wh1 + Wh2.T
    e = jnp.where(pre > 0, pre, alpha * pre)
    temp = jnp.dot(A, e, precision=hp)
    att = jnp.where(temp > 0, e, -9.0e15)
    att = jax.nn.softmax(att, axis=1)
    h_prime = jnp.dot(att, Wh, precision=hp)
    return jax.nn.elu(h_prime) if concat else h_prime


def _xavier_uniform(key, shape, gain):
    fan_in, fan_out = shape[0], shape[1]
    bound = gain * math.sqrt(6.0 / (fan_in + fan_out))
    return jax.random.uniform(key, shape, jnp.float32, -bound, bound)


if __name__ == "__main__":
    # Small shapes consistent with the module (features shrunk from the 768
    # default, kept lane-dense: multiples of 128).
    N, Fin, Fout = 128, 256, 128
    alpha = 0.2

    key = jax.random.PRNGKey(0)
    kW, ka, kh, kadj = jax.random.split(key, 4)
    W = _xavier_uniform(kW, (Fin, Fout), 1.414)
    a = _xavier_uniform(ka, (2 * Fout, 1), 1.414)
    h = jax.random.normal(kh, (1, N, Fin), dtype=jnp.float32)
    adj = (jax.random.uniform(kadj, (1, N, N)) > 0.5).astype(jnp.float32)

    out = graph_attention_layer(h, adj, W, a, alpha=alpha, concat=True)
    out = jax.block_until_ready(out)

    assert out.shape == (N, Fout)
    assert bool(jnp.all(jnp.isfinite(out)))

    # Correctness vs the f32 reference.  bf16 MXU operands, the approximate
    # reciprocal, and the sign-of-(adj@e) mask mean rare boundary elements can
    # differ, so use a tolerant element-agreement fraction rather than a
    # strict allclose.
    ref = _gat_reference(h, adj, W, a, alpha=alpha, concat=True)
    ok = jnp.abs(out - ref) <= (2e-2 + 2e-2 * jnp.abs(ref))
    frac = float(jnp.mean(ok.astype(jnp.float32)))
    assert frac > 0.97, f"kernel/reference agreement too low: {frac}"

    print("KERNEL_OK")
</pallas_src>

<mosaic_0001>
module attributes {stable_mosaic.version = 11 : i64} {
  func.func @_wh_kernel(%arg0: i32, %arg1: memref<128x256xbf16, #tpu.memory_space<vmem>>, %arg2: memref<256x128xbf16, #tpu.memory_space<vmem>>, %arg3: memref<128x2xf32, #tpu.memory_space<vmem>>, %arg4: memref<128x128xbf16, #tpu.memory_space<vmem>>, %arg5: memref<128x2xf32, #tpu.memory_space<vmem>>) attributes {dimension_semantics = [#tpu.dimension_semantics<parallel>], iteration_bounds = array<i64: 1>, scalar_prefetch = 0 : i64, scratch_operands = 0 : i64, tpu.core_type = #tpu.core_type<tc>, window_params = [{transform_indices = @transform_0, window_bounds = array<i64: 128, 256>}, {pipeline_mode = #tpu.pipeline_mode<synchronous>, transform_indices = @transform_1, window_bounds = array<i64: 256, 128>}, {pipeline_mode = #tpu.pipeline_mode<synchronous>, transform_indices = @transform_2, window_bounds = array<i64: 128, 2>}, {transform_indices = @transform_3, window_bounds = array<i64: 128, 128>}, {transform_indices = @transform_4, window_bounds = array<i64: 128, 2>}]} {
    %c0 = arith.constant 0 : index
    %c0_0 = arith.constant 0 : index
    %0 = vector.load %arg1[%c0, %c0_0] : memref<128x256xbf16, #tpu.memory_space<vmem>>, vector<128x256xbf16>
    %c0_1 = arith.constant 0 : index
    %c0_2 = arith.constant 0 : index
    %1 = vector.load %arg2[%c0_1, %c0_2] : memref<256x128xbf16, #tpu.memory_space<vmem>>, vector<256x128xbf16>
    %cst = arith.constant dense<0.000000e+00> : vector<128x128xf32>
    %2 = tpu.matmul %0, %1, %cst {dimension_numbers = #tpu.dot_dimension_numbers<[1], [0], [0], [1], [0, 0, 1, 1], [], []>} : vector<128x256xbf16>, vector<256x128xbf16>, vector<128x128xf32> -> vector<128x128xf32>
    %c0_3 = arith.constant 0 : index
    %c0_4 = arith.constant 0 : index
    %3 = vector.load %arg3[%c0_3, %c0_4] : memref<128x2xf32, #tpu.memory_space<vmem>>, vector<128x2xf32>
    %cst_5 = arith.constant dense<0.000000e+00> : vector<128x2xf32>
    %4 = tpu.matmul %2, %3, %cst_5 {dimension_numbers = #tpu.dot_dimension_numbers<[1], [0], [0], [1], [0, 0, 1, 1], [], []>} : vector<128x128xf32>, vector<128x2xf32>, vector<128x2xf32> -> vector<128x2xf32>
    %c0_6 = arith.constant 0 : index
    %c0_7 = arith.constant 0 : index
    %5 = vector.load %arg5[%c0_6, %c0_7] : memref<128x2xf32, #tpu.memory_space<vmem>>, vector<128x2xf32>
    tpu.vector_store %arg5[%c0_6, %c0_7], %4 {strides = array<i32>} : memref<128x2xf32, #tpu.memory_space<vmem>>, vector<128x2xf32>,
    %6 = arith.truncf %2 : vector<128x128xf32> to vector<128x128xbf16>
    %c0_8 = arith.constant 0 : index
    %c0_9 = arith.constant 0 : index
    %7 = vector.load %arg4[%c0_8, %c0_9] : memref<128x128xbf16, #tpu.memory_space<vmem>>, vector<128x128xbf16>
    tpu.vector_store %arg4[%c0_8, %c0_9], %6 {strides = array<i32>} : memref<128x128xbf16, #tpu.memory_space<vmem>>, vector<128x128xbf16>,
    return
  }
  func.func @transform_0(%arg0: i32) -> (i32, i32) {
    %c0_i32 = arith.constant 0 : i32
    %c0_i32_0 = arith.constant 0 : i32
    return %arg0, %c0_i32 : i32, i32
  }
  func.func @transform_1(%arg0: i32) -> (i32, i32) {
    %c0_i32 = arith.constant 0 : i32
    %c0_i32_0 = arith.constant 0 : i32
    %c0_i32_1 = arith.constant 0 : i32
    return %c0_i32, %c0_i32_0 : i32, i32
  }
  func.func @transform_2(%arg0: i32) -> (i32, i32) {
    %c0_i32 = arith.constant 0 : i32
    %c0_i32_0 = arith.constant 0 : i32
    %c0_i32_1 = arith.constant 0 : i32
    return %c0_i32, %c0_i32_0 : i32, i32
  }
  func.func @transform_3(%arg0: i32) -> (i32, i32) {
    %c0_i32 = arith.constant 0 : i32
    %c0_i32_0 = arith.constant 0 : i32
    return %arg0, %c0_i32 : i32, i32
  }
  func.func @transform_4(%arg0: i32) -> (i32, i32) {
    %c0_i32 = arith.constant 0 : i32
    %c0_i32_0 = arith.constant 0 : i32
    return %arg0, %c0_i32 : i32, i32
  }
}

</mosaic_0001>

<bundles_post_ra>
// kernel: tpu_custom_call.1
= control target key start
LH: loop header
LB: loop body
LE: loop exit
PB: predicated region body
PF: predicated region fallthrough
CT: control target
= control target key end

     0   :  { %10 = vsyncpa [#allocation3], 0  ;;  %s1238_s0 = inlined_call_operand.vmem [shape: bf16[128,256], index: 0, kind: input, shape index: {}]   ;;  %s1239_s1 = inlined_call_operand.hbm [shape: bf16[256,128], index: 1, kind: input, shape index: {}]   ;;  %s1240_s2 = inlined_call_operand.vmem [shape: f32[128,2], index: 2, kind: input, shape index: {}]   ;;  %s1241_s3 = inlined_call_operand.hbm [shape: bf16[128,128], index: 3, kind: output, shape index: {0}]   ;;  %s1242_s4 = inlined_call_operand.vmem [shape: f32[128,2], index: 4, kind: output, shape index: {1}]  }
   0x1   :  { %11 = vsyncpa [#allocation4], 0  ;;  %s1019_s15 = smov [#allocation2]   ;;  %s971_s19 = scalar_lea.hbm %s1239_s1, 2048 }
   0x2   :  { %s19_s16 = sshll.u32 %s1019_s15, 4  ;;  %p972_p0 = scmp.ne.s32.totalorder %s1239_s1, %s971_s19  ;;  %s20_s16 = int_to_ptr.vmem [resolvable:$true] %s19_s16 }
   0x3   :  { %p975_p1 = scmp.lt.u32.totalorder %s971_s19, %s1239_s1 }
   0x5   :  { %p977_p2 = pnand %p975_p1, %p972_p0 }
   0x7   :  { %980 = shalt.err (!%p977_p2)
}
   0x8   :  { %s981_s24 = scalar_lea.vmem %s20_s16, 2048  ;;  %p986_p4 = scmp.lt.s32.totalorder %s20_s16, %s20_s16 }
   0x9   :  { %p982_p3 = scmp.ne.s32.totalorder %s20_s16, %s981_s24  ;;  %p987_p5 = scmp.lt.s32.totalorder %s981_s24, %s981_s24 }
   0xb   :  { %p988_p6 = por %p987_p5, %p986_p4 }
   0xd   :  { %p989_p7 = pnand %p988_p6, %p982_p3 }
   0xf   :  { %992 = shalt.err (!%p989_p7)
}
  0x10   :  { %s1020_s25 = smov 64   ;;  %s1021_s26 = smov 4  }
  0x11   :  { %25 = dma.hbm_to_vmem [thread:$0]  %s1239_s1, 2048, %s20_s16, [#allocation3], %s1020_s25, %s1020_s25, %s1021_s26  }
  0x12   :  { %1015 = dma.done.wait [#allocation3], 2048  }
  0x13   :  { %1016 = vsyncadd [#allocation3], 4294965248  ;;  %v931_v0 = vld [vmem:[#allocation2 + $0x40] sm:$0xff]   ;;  %v933_v2 = vld [vmem:[#allocation2 + $0x48] sm:$0xff]  }
  0x14   :  { %v932_v1 = vld [vmem:[#allocation2] sm:$0xff]   ;;  %743 = vmatprep.subr.bf16.mxu0 %v931_v0  ;;  %v934_v3 = vld [vmem:[#allocation2 + $0x8] sm:$0xff]   ;;  %v935_v4 = vld [vmem:[#allocation2 + $0x50] sm:$0xff]  }
  0x15   :  { %744 = vmatpush3.bf16.msra.mxu0 %v932_v1  ;;  %v936_v5 = vld [vmem:[#allocation2 + $0x10] sm:$0xff]   ;;  %v937_v6 = vld [vmem:[#allocation2 + $0x58] sm:$0xff]   ;;  %v939_v8 = vld [vmem:[#allocation2 + $0x60] sm:$0xff]  }
  0x16   :  { %745 = vmatprep.subr.bf16.mxu0 %v933_v2  ;;  %v938_v7 = vld [vmem:[#allocation2 + $0x18] sm:$0xff]   ;;  %v940_v9 = vld [vmem:[#allocation2 + $0x20] sm:$0xff]   ;;  %v941_v10 = vld [vmem:[#allocation2 + $0x68] sm:$0xff]  }
  0x17   :  { %v949_v11 = vld [vmem:[%s1238_s0 + $0x4] ss:$8 sps:$4 sm:$0xff]   ;;  %v943_v13 = vld [vmem:[#allocation2 + $0x70] sm:$0xff]   ;;  %v945_v15 = vld [vmem:[#allocation2 + $0x78] sm:$0xff]  }
  0x18   :  { %v942_v12 = vld [vmem:[#allocation2 + $0x28] sm:$0xff]   ;;  %288 = vmatprep.mubr.bf16.mxu0 %v949_v11  ;;  %v944_v14 = vld [vmem:[#allocation2 + $0x30] sm:$0xff]   ;;  %v946_v16 = vld [vmem:[#allocation2 + $0x38] sm:$0xff]  }
  0x19   :  { %746 = vmatpush3.bf16.msra.mxu0 %v934_v3  ;;  %v353_v17 = vld [vmem:[%s1240_s2] sm:$0xff]  ;;  %v354_v18 = vld [vmem:[%s1240_s2 + $0x8] sm:$0xff]  ;;  %v355_v19 = vld [vmem:[%s1240_s2 + $0x10] sm:$0xff] }
  0x1a   :  { %747 = vmatprep.subr.bf16.mxu0 %v935_v4  ;;  %v356_v20 = vld [vmem:[%s1240_s2 + $0x18] sm:$0xff]  ;;  %v895_v21 = vpack.c.bf16 %v354_v18, %v353_v17  ;;  %v357_v23 = vld [vmem:[%s1240_s2 + $0x20] sm:$0xff]  ;;  %v358_v24 = vld [vmem:[%s1240_s2 + $0x28] sm:$0xff] }
  0x1b   :  { %v899_v22 = vpack.c.bf16 %v356_v20, %v355_v19  ;;  %v947_v25 = vld [vmem:[%s1238_s0] ss:$8 sps:$4 sm:$0xff]   ;;  %v950_v26 = vld [vmem:[%s1238_s0 + $0x14] ss:$8 sps:$4 sm:$0xff]   ;;  %v903_v27 = vpack.c.bf16 %v358_v24, %v357_v23  ;;  %v952_v33 = vld [vmem:[%s1238_s0 + $0x10] ss:$8 sps:$4 sm:$0xff]  }
  0x1c   :  { %896 = vmatprep.subr.bf16.mxu1 %v895_v21  ;;  %v359_v28 = vld [vmem:[%s1240_s2 + $0x30] sm:$0xff]  ;;  %v360_v29 = vld [vmem:[%s1240_s2 + $0x38] sm:$0xff]  ;;  %v361_v31 = vld [vmem:[%s1240_s2 + $0x40] sm:$0xff] }
  0x1d   :  { %748 = vmatpush3.bf16.msra.mxu0 %v936_v5  ;;  %898 = vmatpush3.bf16.msra.mxu1 %v895_v21  ;;  %v907_v30 = vpack.c.bf16 %v360_v29, %v359_v28  ;;  %v362_v32 = vld [vmem:[%s1240_s2 + $0x48] sm:$0xff]  ;;  %v363_v36 = vld [vmem:[%s1240_s2 + $0x50] sm:$0xff]  ;;  %v364_v37 = vld [vmem:[%s1240_s2 + $0x58] sm:$0xff] }
  0x1e   :  { %749 = vmatprep.subr.bf16.mxu0 %v937_v6  ;;  %900 = vmatprep.subr.bf16.mxu1 %v899_v22  ;;  %v953_v34 = vld [vmem:[%s1238_s0 + $0x24] ss:$8 sps:$4 sm:$0xff]   ;;  %v911_v35 = vpack.c.bf16 %v362_v32, %v361_v31  ;;  %v915_v38 = vpack.c.bf16 %v364_v37, %v363_v36  ;;  %v955_v41 = vld [vmem:[%s1238_s0 + $0x20] ss:$8 sps:$4 sm:$0xff]   ;;  %v956_v42 = vld [vmem:[%s1238_s0 + $0x34] ss:$8 sps:$4 sm:$0xff]  }
  0x1f   :  { %v365_v39 = vld [vmem:[%s1240_s2 + $0x60] sm:$0xff]  ;;  %v366_v40 = vld [vmem:[%s1240_s2 + $0x68] sm:$0xff]  ;;  %v958_v44 = vld [vmem:[%s1238_s0 + $0x30] ss:$8 sps:$4 sm:$0xff]  }
  0x20   :  { %v919_v43 = vpack.c.bf16 %v366_v40, %v365_v39  ;;  %v959_v45 = vld [vmem:[%s1238_s0 + $0x44] ss:$8 sps:$4 sm:$0xff]   ;;  %v961_v46 = vld [vmem:[%s1238_s0 + $0x40] ss:$8 sps:$4 sm:$0xff]   ;;  %v962_v47 = vld [vmem:[%s1238_s0 + $0x54] ss:$8 sps:$4 sm:$0xff]  }
  0x21   :  { %750 = vmatpush3.bf16.msra.mxu0 %v938_v7  ;;  %902 = vmatpush3.bf16.msra.mxu1 %v899_v22  ;;  %v964_v48 = vld [vmem:[%s1238_s0 + $0x50] ss:$8 sps:$4 sm:$0xff]   ;;  %v965_v49 = vld [vmem:[%s1238_s0 + $0x64] ss:$8 sps:$4 sm:$0xff]   ;;  %v967_v50 = vld [vmem:[%s1238_s0 + $0x60] ss:$8 sps:$4 sm:$0xff]  }
  0x22   :  { %751 = vmatprep.subr.bf16.mxu0 %v939_v8  ;;  %904 = vmatprep.subr.bf16.mxu1 %v903_v27  ;;  %v968_v51 = vld [vmem:[%s1238_s0 + $0x74] ss:$8 sps:$4 sm:$0xff]   ;;  %v970_v52 = vld [vmem:[%s1238_s0 + $0x70] ss:$8 sps:$4 sm:$0xff]   ;;  %s1022_s0 = smov [#allocation5]  }
  0x23   :  { %v367_v53 = vld [vmem:[%s1240_s2 + $0x70] sm:$0xff]  ;;  %v368_v54 = vld [vmem:[%s1240_s2 + $0x78] sm:$0xff]  ;;  %s616_s2 = sshll.u32 %s1022_s0, 4  ;;  %s617_s2 = int_to_ptr.vmem [resolvable:$true] %s616_s2 }
  0x24   :  { %v923_v55 = vpack.c.bf16 %v368_v54, %v367_v53  ;;  %s993_s16 = scalar_lea.vmem %s617_s2, 1024  ;;  %p998_p9 = scmp.lt.s32.totalorder %s617_s2, %s617_s2 }
  0x25   :  { %752 = vmatpush3.bf16.msra.mxu0 %v940_v9  ;;  %906 = vmatpush3.bf16.msra.mxu1 %v903_v27  ;;  %p994_p8 = scmp.ne.s32.totalorder %s617_s2, %s993_s16  ;;  %p999_p10 = scmp.lt.s32.totalorder %s993_s16, %s993_s16 }
  0x26   :  { %753 = vmatprep.subr.bf16.mxu0 %v941_v10  ;;  %908 = vmatprep.subr.bf16.mxu1 %v907_v30 }
  0x27   :  { %p1000_p11 = por %p999_p10, %p998_p9 }
  0x29   :  { %754 = vmatpush3.bf16.msra.mxu0 %v942_v12  ;;  %910 = vmatpush3.bf16.msra.mxu1 %v907_v30  ;;  %p1001_p12 = pnand %p1000_p11, %p994_p8 }
  0x2a   :  { %755 = vmatprep.subr.bf16.mxu0 %v943_v13  ;;  %912 = vmatprep.subr.bf16.mxu1 %v911_v35 }
  0x2d   :  { %756 = vmatpush3.bf16.msra.mxu0 %v944_v14  ;;  %914 = vmatpush3.bf16.msra.mxu1 %v911_v35 }
  0x2e   :  { %757 = vmatprep.subr.bf16.mxu0 %v945_v15  ;;  %916 = vmatprep.subr.bf16.mxu1 %v915_v38 }
  0x31   :  { %758 = vmatpush3.bf16.msra.mxu0 %v946_v16  ;;  %918 = vmatpush3.bf16.msra.mxu1 %v915_v38 }
  0x32   :  { %920 = vmatprep.subr.bf16.mxu1 %v919_v43 }
  0x34   :  { %289 = vmatmul.mubr.bf16.vlgmr.msra.gmra.mrb[0].mxu0 %v947_v25 }
  0x35   :  { %296 = vmatprep.mubr.bf16.mxu0 %v950_v26  ;;  %922 = vmatpush3.bf16.msra.mxu1 %v919_v43 }
  0x36   :  { %924 = vmatprep.subr.bf16.mxu1 %v923_v55 }
  0x39   :  { %926 = vmatpush3.bf16.msra.mxu1 %v923_v55 }
  0x3c   :  { %297 = vmatmul.mubr.bf16.gmra.mrb[4].mxu0 %v952_v33 }
  0x3d   :  { %304 = vmatprep.mubr.bf16.mxu0 %v953_v34 }
  0x44   :  { %305 = vmatmul.mubr.bf16.gmra.mrb[8].mxu0 %v955_v41 }
  0x45   :  { %312 = vmatprep.mubr.bf16.mxu0 %v956_v42 }
  0x4c   :  { %313 = vmatmul.mubr.bf16.gmra.mrb[12].mxu0 %v958_v44 }
  0x4d   :  { %320 = vmatprep.mubr.bf16.mxu0 %v959_v45 }
  0x54   :  { %321 = vmatmul.mubr.bf16.gmra.mrb[16].mxu0 %v961_v46 }
  0x55   :  { %328 = vmatprep.mubr.bf16.mxu0 %v962_v47 }
  0x5c   :  { %329 = vmatmul.mubr.bf16.gmra.mrb[20].mxu0 %v964_v48 }
  0x5d   :  { %336 = vmatprep.mubr.bf16.mxu0 %v965_v49 }
  0x64   :  { %337 = vmatmul.mubr.bf16.gmra.mrb[24].mxu0 %v967_v50 }
  0x65   :  { %344 = vmatprep.mubr.bf16.mxu0 %v968_v51 }
  0x6c   :  { %345 = vmatmul.mubr.bf16.gmra.mrb[28].mxu0 %v970_v52 }
 0x107   :  { %v759_v56 = vpop.f32.mrb[0].mxu0 }
 0x108   :  { %v760_v57 = vpop.f32.mrb[1].mxu0 }
 0x109   :  { %v761_v58 = vadd.f32 %v760_v57, %v759_v56  ;;  %v762_v59 = vpop.f32.mrb[2].mxu0 }
 0x10a   :  { %v763_v60 = vpop.f32.mrb[3].mxu0 }
 0x10b   :  { %v764_v61 = vadd.f32 %v763_v60, %v762_v59  ;;  %871 = vmatprep.mubr.f32.mxu1 %v761_v58 }
 0x10d   :  { %v699_v62 = vpack.c.bf16 %v764_v61, %v761_v58  ;;  %872 = vmatmul.mubr.f32.vlgmr.msra.gmra.mrb[0].mxu1 %v764_v61 }
 0x10f   :  { %700 = vst [vmem:[#allocation5] sm:$0xff] %v699_v62   ;;  %v765_v63 = vpop.f32.mrb[4].mxu0 }
 0x110   :  { %v766_v0 = vpop.f32.mrb[5].mxu0 }
 0x111   :  { %v767_v1 = vadd.f32 %v766_v0, %v765_v63  ;;  %v768_v2 = vpop.f32.mrb[6].mxu0 }
 0x112   :  { %v769_v3 = vpop.f32.mrb[7].mxu0 }
 0x113   :  { %v770_v4 = vadd.f32 %v769_v3, %v768_v2  ;;  %874 = vmatprep.mubr.f32.mxu1 %v767_v1 }
 0x115   :  { %v704_v5 = vpack.c.bf16 %v770_v4, %v767_v1  ;;  %875 = vmatmul.mubr.f32.gmra.mrb[2].mxu1 %v770_v4 }
 0x117   :  { %736 = vst [vmem:[#allocation5 + $0x8] sm:$0xff] %v704_v5   ;;  %v771_v6 = vpop.f32.mrb[8].mxu0 }
 0x118   :  { %v772_v7 = vpop.f32.mrb[9].mxu0 }
 0x119   :  { %v773_v8 = vadd.f32 %v772_v7, %v771_v6  ;;  %v774_v9 = vpop.f32.mrb[10].mxu0 }
 0x11a   :  { %v775_v10 = vpop.f32.mrb[11].mxu0 }
 0x11b   :  { %v776_v11 = vadd.f32 %v775_v10, %v774_v9  ;;  %877 = vmatprep.mubr.f32.mxu1 %v773_v8 }
 0x11d   :  { %v709_v12 = vpack.c.bf16 %v776_v11, %v773_v8  ;;  %878 = vmatmul.mubr.f32.gmra.mrb[4].mxu1 %v776_v11 }
 0x11f   :  { %737 = vst [vmem:[#allocation5 + $0x10] sm:$0xff] %v709_v12   ;;  %v777_v13 = vpop.f32.mrb[12].mxu0 }
 0x120   :  { %v778_v14 = vpop.f32.mrb[13].mxu0 }
 0x121   :  { %v779_v15 = vadd.f32 %v778_v14, %v777_v13  ;;  %v780_v16 = vpop.f32.mrb[14].mxu0 }
 0x122   :  { %v781_v17 = vpop.f32.mrb[15].mxu0 }
 0x123   :  { %v782_v18 = vadd.f32 %v781_v17, %v780_v16  ;;  %880 = vmatprep.mubr.f32.mxu1 %v779_v15 }
 0x125   :  { %v714_v19 = vpack.c.bf16 %v782_v18, %v779_v15  ;;  %881 = vmatmul.mubr.f32.gmra.mrb[6].mxu1 %v782_v18 }
 0x127   :  { %738 = vst [vmem:[#allocation5 + $0x18] sm:$0xff] %v714_v19   ;;  %v783_v20 = vpop.f32.mrb[16].mxu0 }
 0x128   :  { %v784_v21 = vpop.f32.mrb[17].mxu0 }
 0x129   :  { %v785_v22 = vadd.f32 %v784_v21, %v783_v20  ;;  %v786_v23 = vpop.f32.mrb[18].mxu0 }
 0x12a   :  { %v787_v24 = vpop.f32.mrb[19].mxu0 }
 0x12b   :  { %v788_v25 = vadd.f32 %v787_v24, %v786_v23  ;;  %883 = vmatprep.mubr.f32.mxu1 %v785_v22 }
 0x12d   :  { %v719_v26 = vpack.c.bf16 %v788_v25, %v785_v22  ;;  %884 = vmatmul.mubr.f32.gmra.mrb[8].mxu1 %v788_v25 }
 0x12f   :  { %739 = vst [vmem:[#allocation5 + $0x20] sm:$0xff] %v719_v26   ;;  %v789_v27 = vpop.f32.mrb[20].mxu0 }
 0x130   :  { %v790_v28 = vpop.f32.mrb[21].mxu0 }
 0x131   :  { %v791_v29 = vadd.f32 %v790_v28, %v789_v27  ;;  %v792_v30 = vpop.f32.mrb[22].mxu0 }
 0x132   :  { %v793_v31 = vpop.f32.mrb[23].mxu0 }
 0x133   :  { %v794_v32 = vadd.f32 %v793_v31, %v792_v30  ;;  %886 = vmatprep.mubr.f32.mxu1 %v791_v29 }
 0x135   :  { %v724_v33 = vpack.c.bf16 %v794_v32, %v791_v29  ;;  %887 = vmatmul.mubr.f32.gmra.mrb[10].mxu1 %v794_v32 }
 0x137   :  { %740 = vst [vmem:[#allocation5 + $0x28] sm:$0xff] %v724_v33   ;;  %v795_v34 = vpop.f32.mrb[24].mxu0 }
 0x138   :  { %v796_v35 = vpop.f32.mrb[25].mxu0 }
 0x139   :  { %v797_v36 = vadd.f32 %v796_v35, %v795_v34  ;;  %v798_v37 = vpop.f32.mrb[26].mxu0 }
 0x13a   :  { %v799_v38 = vpop.f32.mrb[27].mxu0 }
 0x13b   :  { %v800_v39 = vadd.f32 %v799_v38, %v798_v37  ;;  %889 = vmatprep.mubr.f32.mxu1 %v797_v36 }
 0x13d   :  { %v729_v40 = vpack.c.bf16 %v800_v39, %v797_v36  ;;  %890 = vmatmul.mubr.f32.gmra.mrb[12].mxu1 %v800_v39 }
 0x13f   :  { %741 = vst [vmem:[#allocation5 + $0x30] sm:$0xff] %v729_v40   ;;  %v801_v41 = vpop.f32.mrb[28].mxu0 }
 0x140   :  { %v802_v42 = vpop.f32.mrb[29].mxu0 }
 0x141   :  { %v803_v43 = vadd.f32 %v802_v42, %v801_v41  ;;  %v804_v44 = vpop.f32.mrb[30].mxu0 }
 0x142   :  { %v805_v45 = vpop.f32.mrb[31].mxu0 }
 0x143   :  { %v806_v46 = vadd.f32 %v805_v45, %v804_v44  ;;  %892 = vmatprep.mubr.f32.mxu1 %v803_v43 }
 0x145   :  { %v734_v47 = vpack.c.bf16 %v806_v46, %v803_v43  ;;  %893 = vmatmul.mubr.f32.gmra.mrb[14].mxu1 %v806_v46 }
 0x147   :  { %742 = vst [vmem:[#allocation5 + $0x38] sm:$0xff] %v734_v47  }
 0x148   :  { %1004 = shalt.err (!%p1001_p12)
}
 0x149   :  { %s1005_s19 = scalar_lea.hbm %s1241_s3, 1024 }
 0x14a   :  { %p1006_p13 = scmp.ne.s32.totalorder %s1241_s3, %s1005_s19  ;;  %p1009_p0 = scmp.lt.u32.totalorder %s1005_s19, %s1241_s3 }
 0x14c   :  { %p1011_p1 = pnand %p1009_p0, %p1006_p13 }
 0x14e   :  { %1014 = shalt.err (!%p1011_p1)
}
 0x14f   :  { %622 = dma.vmem_to_hbm [thread:$0]  %s617_s2, 1024, %s1241_s3, [#allocation4], %s1020_s25, %s1020_s25, %s1021_s26   ;;  %vm514_vm0 = vcmask 15360  }
 0x1e0   :  { %v873_v48 = vpop.f32.mrb[0].mxu1 }
 0x1e1   :  { %516 = vst.msk [vmem:[%s1242_s4 + $0x8] sm:$0xff] %vm514_vm0, %v873_v48  ;;  %v435_v49 = vpop.f32.mrb[1].mxu1 }
 0x1e2   :  { %515 = vst.msk [vmem:[%s1242_s4] sm:$0xff] %vm514_vm0, %v435_v49 }
 0x1e8   :  { %v876_v50 = vpop.f32.mrb[2].mxu1 }
 0x1e9   :  { %518 = vst.msk [vmem:[%s1242_s4 + $0x18] sm:$0xff] %vm514_vm0, %v876_v50  ;;  %v445_v51 = vpop.f32.mrb[3].mxu1 }
 0x1ea   :  { %517 = vst.msk [vmem:[%s1242_s4 + $0x10] sm:$0xff] %vm514_vm0, %v445_v51 }
 0x1f0   :  { %v879_v52 = vpop.f32.mrb[4].mxu1 }
 0x1f1   :  { %520 = vst.msk [vmem:[%s1242_s4 + $0x28] sm:$0xff] %vm514_vm0, %v879_v52  ;;  %v455_v53 = vpop.f32.mrb[5].mxu1 }
 0x1f2   :  { %519 = vst.msk [vmem:[%s1242_s4 + $0x20] sm:$0xff] %vm514_vm0, %v455_v53 }
 0x1f8   :  { %v882_v54 = vpop.f32.mrb[6].mxu1 }
 0x1f9   :  { %522 = vst.msk [vmem:[%s1242_s4 + $0x38] sm:$0xff] %vm514_vm0, %v882_v54  ;;  %v465_v55 = vpop.f32.mrb[7].mxu1 }
 0x1fa   :  { %521 = vst.msk [vmem:[%s1242_s4 + $0x30] sm:$0xff] %vm514_vm0, %v465_v55 }
 0x200   :  { %v885_v56 = vpop.f32.mrb[8].mxu1 }
 0x201   :  { %524 = vst.msk [vmem:[%s1242_s4 + $0x48] sm:$0xff] %vm514_vm0, %v885_v56  ;;  %v475_v57 = vpop.f32.mrb[9].mxu1 }
 0x202   :  { %523 = vst.msk [vmem:[%s1242_s4 + $0x40] sm:$0xff] %vm514_vm0, %v475_v57 }
 0x208   :  { %v888_v58 = vpop.f32.mrb[10].mxu1 }
 0x209   :  { %526 = vst.msk [vmem:[%s1242_s4 + $0x58] sm:$0xff] %vm514_vm0, %v888_v58  ;;  %v485_v59 = vpop.f32.mrb[11].mxu1 }
 0x20a   :  { %525 = vst.msk [vmem:[%s1242_s4 + $0x50] sm:$0xff] %vm514_vm0, %v485_v59 }
 0x210   :  { %v891_v60 = vpop.f32.mrb[12].mxu1 }
 0x211   :  { %528 = vst.msk [vmem:[%s1242_s4 + $0x68] sm:$0xff] %vm514_vm0, %v891_v60  ;;  %v495_v61 = vpop.f32.mrb[13].mxu1 }
 0x212   :  { %527 = vst.msk [vmem:[%s1242_s4 + $0x60] sm:$0xff] %vm514_vm0, %v495_v61 }
 0x218   :  { %v894_v62 = vpop.f32.mrb[14].mxu1 }
 0x219   :  { %530 = vst.msk [vmem:[%s1242_s4 + $0x78] sm:$0xff] %vm514_vm0, %v894_v62  ;;  %v505_v63 = vpop.f32.mrb[15].mxu1 }
 0x21a   :  { %529 = vst.msk [vmem:[%s1242_s4 + $0x70] sm:$0xff] %vm514_vm0, %v505_v63 }
 0x21b   :  { %1017 = dma.done.wait [#allocation4], 1024  }
 0x21c   :  { %1018 = vsyncadd [#allocation4], 4294966272 }
 0x21d   :  { %630 = vsyncpa [#allocation3], 1 }
 0x21e   :  { %631 = vsyncpa [#allocation4], 1 }

</bundles_post_ra>
